<compile_context>
chip_gen: v6e
topology: v6e:2x2x1
jax: 0.10.0
libtpu: 0.0.40
codegen_flags: <defaults>
</compile_context>

<pallas_src>
import math
import functools

import jax
import jax.numpy as jnp
from jax import lax
from jax.experimental import pallas as pl
from jax.experimental.pallas import tpu as pltpu


# ----------------------------------------------------------------------------
# Kernel: one (batch, q-tile, head) triple per grid step.
# ----------------------------------------------------------------------------
def _attention_kernel(x_ref, wq_ref, wk_ref, wv_ref, wo_ref, bo_ref,
                      o_ref, acc_ref, xbf_ref, *, q_tile):
    """
    x_ref  : (S, Din)    activations for this batch element (resident across qi,h)
    wq_ref : (Din, hd)   this head's Q projection (bf16, 1/sqrt(hd) folded in)
    wk_ref : (Din, hd)   this head's K projection (bf16)
    wv_ref : (Din, hd)   this head's V projection (bf16)
    wo_ref : (hd, E)     this head's slice of the o_proj weight (bf16)
    bo_ref : (1, E)      o_proj bias (f32)
    o_ref  : (Tq, E)     output tile
    acc_ref: (Tq, E) f32 o_proj accumulator (scratch)
    xbf_ref: (S, Din) bf16 activation cast cache (scratch)
    """
    qi = pl.program_id(1)
    h = pl.program_id(2)
    last_h = pl.num_programs(2) - 1

    # Init accumulator and cast activations to bf16 once per (batch, q-tile);
    # the bf16 slab is reused across all heads of this (b, qi).
    @pl.when(h == 0)
    def _():
        acc_ref[...] = jnp.zeros_like(acc_ref)
        xbf_ref[...] = x_ref[...].astype(jnp.bfloat16)

    q_start = pl.multiple_of(qi * q_tile, q_tile)
    xq = xbf_ref[pl.ds(q_start, q_tile), :]                              # (Tq, Din)
    xf = xbf_ref[...]                                                    # (S, Din)

    # Per-head projections (scale already folded into wq).
    q = jnp.dot(xq, wq_ref[...], preferred_element_type=jnp.float32)    # (Tq, hd)
    k = jnp.dot(xf, wk_ref[...], preferred_element_type=jnp.float32)    # (S, hd)
    v = jnp.dot(xf, wv_ref[...], preferred_element_type=jnp.float32)    # (S, hd)

    # q @ k^T with no in-kernel transpose: contract the last dim of both.
    logits = lax.dot_general(
        q.astype(jnp.bfloat16), k.astype(jnp.bfloat16),
        dimension_numbers=(((1,), (1,)), ((), ())),
        preferred_element_type=jnp.float32)                              # (Tq, S)

    # Softmax elementwise math kept in f32 (v5e has no bf16 VPU/EUP).
    m = jnp.max(logits, axis=-1, keepdims=True)
    p = jnp.exp(logits - m)
    denom = jnp.sum(p, axis=-1, keepdims=True)

    # Unnormalized P@V, then deferred normalization on (Tq, hd) not (Tq, S).
    ctx = jnp.dot(p.astype(jnp.bfloat16), v.astype(jnp.bfloat16),
                  preferred_element_type=jnp.float32)                    # (Tq, hd)
    ctx = ctx * pl.reciprocal(denom, approx=True)                        # EUP divide

    # o_proj decomposed over heads: out = sum_h ctx_h @ Wo[h*hd:(h+1)*hd, :].
    acc_ref[...] += jnp.dot(ctx.astype(jnp.bfloat16), wo_ref[...],
                            preferred_element_type=jnp.float32)          # (Tq, E)

    @pl.when(h == last_h)
    def _():
        o_ref[...] = (acc_ref[...] + bo_ref[...]).astype(o_ref.dtype)    # lane-dense


# ----------------------------------------------------------------------------
# One-time parameter prep (layout, per-head split, scale fold, bf16 cast).
# ----------------------------------------------------------------------------
def prepare_attention_params(w_qkv, w_o, b_o, num_heads,
                             param_dtype=jnp.bfloat16):
    """
    w_qkv : (3*E, Din)  PyTorch qkv_proj.weight (bias=False)
    w_o   : (E, E)      PyTorch o_proj.weight
    b_o   : (E,)        PyTorch o_proj.bias
    """
    E3, _ = w_qkv.shape
    E = E3 // 3
    hd = E // num_heads
    scale = 1.0 / math.sqrt(hd)

    # PyTorch layout: qkv column c = h*3hd + j, j in [0,hd)=q, [hd,2hd)=k, [2hd,3hd)=v.
    w = w_qkv.reshape(num_heads, 3, hd, -1)                 # (H, 3, hd, Din)
    wq = jnp.transpose(w[:, 0], (0, 2, 1)) * scale          # (H, Din, hd), scale folded
    wk = jnp.transpose(w[:, 1], (0, 2, 1))                  # (H, Din, hd)
    wv = jnp.transpose(w[:, 2], (0, 2, 1))                  # (H, Din, hd)
    wo = w_o.T.reshape(num_heads, hd, E)                    # (H, hd, E)
    bo = b_o.reshape(1, E).astype(jnp.float32)

    return (wq.astype(param_dtype), wk.astype(param_dtype),
            wv.astype(param_dtype), wo.astype(param_dtype), bo)


def _vmem_limit_bytes(S, Din, E, hd, tq, x_itemsize):
    est = (
        2 * S * Din * x_itemsize          # x block (double-buffered)
        + S * Din * 2                     # bf16 activation scratch
        + 2 * 3 * Din * hd * 2            # per-head wq/wk/wv (bf16, double-buffered)
        + 2 * hd * E * 2                  # per-head wo
        + 2 * E * 4                       # bias
        + 2 * tq * E * x_itemsize         # out block
        + tq * E * 4                      # f32 o_proj accumulator
        + 2 * S * hd * 4 + tq * hd * 4    # k/v/q f32 temporaries
        + 2 * tq * S * 4                  # logits + exp temporaries
    )
    # 2x headroom for compiler temporaries; clamp to a value legal on every
    # generation (v7x physical VMEM is 64 MiB).
    return int(min(64 * 1024 * 1024, max(32 * 1024 * 1024, 2 * est)))


# ----------------------------------------------------------------------------
# Wrapper: single fused pallas_call.
# ----------------------------------------------------------------------------
def attention_forward(x, params, num_heads, q_tile=None):
    """
    x      : (B, S, Din)
    params : output of prepare_attention_params
    """
    wq, wk, wv, wo, bo = params
    B, S, Din = x.shape
    H, _, hd = wq.shape
    E = H * hd
    assert H == num_heads

    if q_tile is None:
        q_tile = S
        for t in (256, 128):               # >=256 preferred on v6e/v7x MXU
            if S % t == 0:
                q_tile = t
                break
    assert S % q_tile == 0
    nq = S // q_tile

    kernel = functools.partial(_attention_kernel, q_tile=q_tile)

    grid_spec = pltpu.PrefetchScalarGridSpec(
        num_scalar_prefetch=0,
        grid=(B, nq, H),                   # head axis last = reduction axis
        in_specs=[
            # Full sequence per batch element; constant across (qi, h) so it
            # stays resident in VMEM until the batch index changes.
            pl.BlockSpec((pl.Squeezed(), S, Din), lambda b, qi, h: (b, 0, 0)),
            # Per-head weight blocks (streamed / double-buffered by Pallas;
            # keeps the VMEM footprint v7x-safe instead of holding all of wqkv).
            pl.BlockSpec((pl.Squeezed(), Din, hd), lambda b, qi, h: (h, 0, 0)),
            pl.BlockSpec((pl.Squeezed(), Din, hd), lambda b, qi, h: (h, 0, 0)),
            pl.BlockSpec((pl.Squeezed(), Din, hd), lambda b, qi, h: (h, 0, 0)),
            pl.BlockSpec((pl.Squeezed(), hd, E), lambda b, qi, h: (h, 0, 0)),
            pl.BlockSpec((1, E), lambda b, qi, h: (0, 0)),
        ],
        out_specs=pl.BlockSpec((pl.Squeezed(), q_tile, E),
                               lambda b, qi, h: (b, qi, 0)),
        scratch_shapes=[
            pltpu.VMEM((q_tile, E), jnp.float32),     # o_proj accumulator
            pltpu.VMEM((S, Din), jnp.bfloat16),       # bf16 activation cache
        ],
    )

    return pl.pallas_call(
        kernel,
        out_shape=jax.ShapeDtypeStruct((B, S, E), x.dtype),
        grid_spec=grid_spec,
        compiler_params=pltpu.CompilerParams(
            dimension_semantics=("parallel", "parallel", "arbitrary"),
            vmem_limit_bytes=_vmem_limit_bytes(S, Din, E, hd, q_tile,
                                               x.dtype.itemsize),
        ),
    )(x, wq, wk, wv, wo, bo)


# ----------------------------------------------------------------------------
# Pure-JAX reference (correctness check, f32 throughout)
# ----------------------------------------------------------------------------
def attention_reference(x, w_qkv, w_o, b_o, num_heads):
    B, S, Din = x.shape
    E = w_qkv.shape[0] // 3
    hd = E // num_heads
    qkv = x @ w_qkv.T
    qkv = qkv.reshape(B, S, num_heads, 3 * hd).transpose(0, 2, 1, 3)
    q, k, v = qkv[..., :hd], qkv[..., hd:2 * hd], qkv[..., 2 * hd:]
    logits = jnp.einsum("bhqd,bhkd->bhqk", q, k) / math.sqrt(hd)
    attn = jax.nn.softmax(logits, axis=-1)
    vals = jnp.einsum("bhqk,bhkd->bhqd", attn, v)
    vals = vals.transpose(0, 2, 1, 3).reshape(B, S, E)
    return vals @ w_o.T + b_o


if __name__ == "__main__":
    # Module hyper-params (small, consistent with the PyTorch __init__)
    batch = 2
    seq = 8
    input_dim = 32
    embed_dim = 32
    num_heads = 4
    max_context_len = seq  # > 0

    key = jax.random.PRNGKey(0)
    kx, kq, ko = jax.random.split(key, 3)

    # Deterministic "init_modules"-style parameters (sigma_main=sigma_proj=0.02)
    x = jax.random.normal(kx, (batch, seq, input_dim), dtype=jnp.float32)
    w_qkv = 0.02 * jax.random.normal(kq, (3 * embed_dim, input_dim), dtype=jnp.float32)
    w_o = 0.02 * jax.random.normal(ko, (embed_dim, embed_dim), dtype=jnp.float32)
    b_o = jnp.zeros((embed_dim,), dtype=jnp.float32)

    params = prepare_attention_params(w_qkv, w_o, b_o, num_heads)
    out = attention_forward(x, params, num_heads)
    out = jax.block_until_ready(out)

    ref = attention_reference(x, w_qkv, w_o, b_o, num_heads)
    assert out.shape == (batch, seq, embed_dim)
    # bf16 MXU operands (f32 accumulation) + approx EUP reciprocal: loosened
    # tolerance vs the pure-f32 reference.
    assert jnp.allclose(out, ref, atol=1e-2, rtol=1e-2), "mismatch vs reference"

    print("KERNEL_OK")
</pallas_src>

<mosaic_0001>
module attributes {stable_mosaic.version = 11 : i64} {
  func.func @_attention_kernel(%arg0: i32, %arg1: i32, %arg2: i32, %arg3: memref<1x8x32xf32, #tpu.memory_space<vmem>>, %arg4: memref<1x32x8xbf16, #tpu.memory_space<vmem>>, %arg5: memref<1x32x8xbf16, #tpu.memory_space<vmem>>, %arg6: memref<1x32x8xbf16, #tpu.memory_space<vmem>>, %arg7: memref<1x8x32xbf16, #tpu.memory_space<vmem>>, %arg8: memref<1x32xf32, #tpu.memory_space<vmem>>, %arg9: memref<1x8x32xf32, #tpu.memory_space<vmem>>, %arg10: memref<8x32xf32, #tpu.memory_space<vmem>>, %arg11: memref<8x32xbf16, #tpu.memory_space<vmem>>) attributes {dimension_semantics = [#tpu.dimension_semantics<parallel>, #tpu.dimension_semantics<parallel>, #tpu.dimension_semantics<arbitrary>], iteration_bounds = array<i64: 2, 1, 4>, scalar_prefetch = 0 : i64, scratch_operands = 2 : i64, tpu.core_type = #tpu.core_type<tc>, window_params = [{transform_indices = @transform_0, window_bounds = array<i64: 1, 8, 32>}, {transform_indices = @transform_1, window_bounds = array<i64: 1, 32, 8>}, {transform_indices = @transform_2, window_bounds = array<i64: 1, 32, 8>}, {transform_indices = @transform_3, window_bounds = array<i64: 1, 32, 8>}, {transform_indices = @transform_4, window_bounds = array<i64: 1, 8, 32>}, {pipeline_mode = #tpu.pipeline_mode<synchronous>, transform_indices = @transform_5, window_bounds = array<i64: 1, 32>}, {transform_indices = @transform_6, window_bounds = array<i64: 1, 8, 32>}]} {
    %c0_i32 = arith.constant 0 : i32
    %0 = arith.cmpi eq, %arg2, %c0_i32 : i32
    %1 = arith.extui %0 : i1 to i32
    %c0_i32_0 = arith.constant 0 : i32
    %2 = arith.cmpi ne, %1, %c0_i32_0 : i32
    scf.if %2 {
      %cst_27 = arith.constant 0.000000e+00 : f32
      %43 = vector.broadcast %cst_27 : f32 to vector<8x32xf32>
      %c0_28 = arith.constant 0 : index
      %c0_29 = arith.constant 0 : index
      %44 = vector.load %arg10[%c0_28, %c0_29] : memref<8x32xf32, #tpu.memory_space<vmem>>, vector<8x32xf32>
      tpu.vector_store %arg10[%c0_28, %c0_29], %43 {strides = array<i32>} : memref<8x32xf32, #tpu.memory_space<vmem>>, vector<8x32xf32>,
      %c0_30 = arith.constant 0 : index
      %c0_31 = arith.constant 0 : index
      %c0_32 = arith.constant 0 : index
      %45 = vector.load %arg3[%c0_30, %c0_31, %c0_32] : memref<1x8x32xf32, #tpu.memory_space<vmem>>, vector<1x8x32xf32>
      %46 = vector.shape_cast %45 : vector<1x8x32xf32> to vector<8x32xf32>
      %47 = arith.truncf %46 : vector<8x32xf32> to vector<8x32xbf16>
      %c0_33 = arith.constant 0 : index
      %c0_34 = arith.constant 0 : index
      %48 = vector.load %arg11[%c0_33, %c0_34] : memref<8x32xbf16, #tpu.memory_space<vmem>>, vector<8x32xbf16>
      tpu.vector_store %arg11[%c0_33, %c0_34], %47 {strides = array<i32>} : memref<8x32xbf16, #tpu.memory_space<vmem>>, vector<8x32xbf16>,
    } else {
    }
    %c8_i32 = arith.constant 8 : i32
    %3 = arith.muli %arg1, %c8_i32 : i32
    %4 = tpu.assume_multiple %3, 8 : i32
    %5 = arith.index_cast %4 : i32 to index
    %c0 = arith.constant 0 : index
    %6 = vector.load %arg11[%5, %c0] : memref<8x32xbf16, #tpu.memory_space<vmem>>, vector<8x32xbf16>
    %c0_1 = arith.constant 0 : index
    %c0_2 = arith.constant 0 : index
    %7 = vector.load %arg11[%c0_1, %c0_2] : memref<8x32xbf16, #tpu.memory_space<vmem>>, vector<8x32xbf16>
    %c0_3 = arith.constant 0 : index
    %c0_4 = arith.constant 0 : index
    %c0_5 = arith.constant 0 : index
    %8 = vector.load %arg4[%c0_3, %c0_4, %c0_5] : memref<1x32x8xbf16, #tpu.memory_space<vmem>>, vector<1x32x8xbf16>
    %9 = vector.shape_cast %8 : vector<1x32x8xbf16> to vector<32x8xbf16>
    %cst = arith.constant dense<0.000000e+00> : vector<8x8xf32>
    %10 = tpu.matmul %6, %9, %cst {dimension_numbers = #tpu.dot_dimension_numbers<[1], [0], [0], [1], [0, 0, 1, 1], [], []>} : vector<8x32xbf16>, vector<32x8xbf16>, vector<8x8xf32> -> vector<8x8xf32>
    %c0_6 = arith.constant 0 : index
    %c0_7 = arith.constant 0 : index
    %c0_8 = arith.constant 0 : index
    %11 = vector.load %arg5[%c0_6, %c0_7, %c0_8] : memref<1x32x8xbf16, #tpu.memory_space<vmem>>, vector<1x32x8xbf16>
    %12 = vector.shape_cast %11 : vector<1x32x8xbf16> to vector<32x8xbf16>
    %cst_9 = arith.constant dense<0.000000e+00> : vector<8x8xf32>
    %13 = tpu.matmul %7, %12, %cst_9 {dimension_numbers = #tpu.dot_dimension_numbers<[1], [0], [0], [1], [0, 0, 1, 1], [], []>} : vector<8x32xbf16>, vector<32x8xbf16>, vector<8x8xf32> -> vector<8x8xf32>
    %c0_10 = arith.constant 0 : index
    %c0_11 = arith.constant 0 : index
    %c0_12 = arith.constant 0 : index
    %14 = vector.load %arg6[%c0_10, %c0_11, %c0_12] : memref<1x32x8xbf16, #tpu.memory_space<vmem>>, vector<1x32x8xbf16>
    %15 = vector.shape_cast %14 : vector<1x32x8xbf16> to vector<32x8xbf16>
    %cst_13 = arith.constant dense<0.000000e+00> : vector<8x8xf32>
    %16 = tpu.matmul %7, %15, %cst_13 {dimension_numbers = #tpu.dot_dimension_numbers<[1], [0], [0], [1], [0, 0, 1, 1], [], []>} : vector<8x32xbf16>, vector<32x8xbf16>, vector<8x8xf32> -> vector<8x8xf32>
    %17 = arith.truncf %10 : vector<8x8xf32> to vector<8x8xbf16>
    %18 = arith.truncf %13 : vector<8x8xf32> to vector<8x8xbf16>
    %cst_14 = arith.constant dense<0.000000e+00> : vector<8x8xf32>
    %19 = tpu.matmul %17, %18, %cst_14 {dimension_numbers = #tpu.dot_dimension_numbers<[1], [1], [0], [0], [0, 0, 1, 0], [], []>} : vector<8x8xbf16>, vector<8x8xbf16>, vector<8x8xf32> -> vector<8x8xf32>
    %cst_15 = arith.constant dense<0xFF800000> : vector<8xf32>
    %20 = vector.multi_reduction <maximumf>, %19, %cst_15 [1] : vector<8x8xf32> to vector<8xf32>
    %21 = vector.shape_cast %20 : vector<8xf32> to vector<8x1xf32>
    %22 = vector.broadcast %21 : vector<8x1xf32> to vector<8x8xf32>
    %23 = arith.subf %19, %22 : vector<8x8xf32>
    %24 = math.exp %23 : vector<8x8xf32>
    %cst_16 = arith.constant dense<0.000000e+00> : vector<8xf32>
    %25 = vector.multi_reduction <add>, %24, %cst_16 [1] : vector<8x8xf32> to vector<8xf32>
    %26 = vector.shape_cast %25 : vector<8xf32> to vector<8x1xf32>
    %27 = arith.truncf %24 : vector<8x8xf32> to vector<8x8xbf16>
    %28 = arith.truncf %16 : vector<8x8xf32> to vector<8x8xbf16>
    %cst_17 = arith.constant dense<0.000000e+00> : vector<8x8xf32>
    %29 = tpu.matmul %27, %28, %cst_17 {dimension_numbers = #tpu.dot_dimension_numbers<[1], [0], [0], [1], [0, 0, 1, 1], [], []>} : vector<8x8xbf16>, vector<8x8xbf16>, vector<8x8xf32> -> vector<8x8xf32>
    %30 = tpu.reciprocal %26 {approx = true} : vector<8x1xf32> -> vector<8x1xf32>
    %31 = vector.broadcast %30 : vector<8x1xf32> to vector<8x8xf32>
    %32 = arith.mulf %29, %31 : vector<8x8xf32>
    %c0_18 = arith.constant 0 : index
    %c0_19 = arith.constant 0 : index
    %33 = vector.load %arg10[%c0_18, %c0_19] : memref<8x32xf32, #tpu.memory_space<vmem>>, vector<8x32xf32>
    %34 = arith.truncf %32 : vector<8x8xf32> to vector<8x8xbf16>
    %c0_20 = arith.constant 0 : index
    %c0_21 = arith.constant 0 : index
    %c0_22 = arith.constant 0 : index
    %35 = vector.load %arg7[%c0_20, %c0_21, %c0_22] : memref<1x8x32xbf16, #tpu.memory_space<vmem>>, vector<1x8x32xbf16>
    %36 = vector.shape_cast %35 : vector<1x8x32xbf16> to vector<8x32xbf16>
    %cst_23 = arith.constant dense<0.000000e+00> : vector<8x32xf32>
    %37 = tpu.matmul %34, %36, %cst_23 {dimension_numbers = #tpu.dot_dimension_numbers<[1], [0], [0], [1], [0, 0, 1, 1], [], []>} : vector<8x8xbf16>, vector<8x32xbf16>, vector<8x32xf32> -> vector<8x32xf32>
    %38 = arith.addf %33, %37 : vector<8x32xf32>
    %c0_24 = arith.constant 0 : index
    %c0_25 = arith.constant 0 : index
    %39 = vector.load %arg10[%c0_24, %c0_25] : memref<8x32xf32, #tpu.memory_space<vmem>>, vector<8x32xf32>
    tpu.vector_store %arg10[%c0_24, %c0_25], %38 {strides = array<i32>} : memref<8x32xf32, #tpu.memory_space<vmem>>, vector<8x32xf32>,
    %c3_i32 = arith.constant 3 : i32
    %40 = arith.cmpi eq, %arg2, %c3_i32 : i32
    %41 = arith.extui %40 : i1 to i32
    %c0_i32_26 = arith.constant 0 : i32
    %42 = arith.cmpi ne, %41, %c0_i32_26 : i32
    scf.if %42 {
      %c0_27 = arith.constant 0 : index
      %c0_28 = arith.constant 0 : index
      %43 = vector.load %arg10[%c0_27, %c0_28] : memref<8x32xf32, #tpu.memory_space<vmem>>, vector<8x32xf32>
      %c0_29 = arith.constant 0 : index
      %c0_30 = arith.constant 0 : index
      %44 = vector.load %arg8[%c0_29, %c0_30] : memref<1x32xf32, #tpu.memory_space<vmem>>, vector<1x32xf32>
      %45 = vector.broadcast %44 : vector<1x32xf32> to vector<8x32xf32>
      %46 = arith.addf %43, %45 : vector<8x32xf32>
      %c0_31 = arith.constant 0 : index
      %c0_32 = arith.constant 0 : index
      %c0_33 = arith.constant 0 : index
      %47 = vector.load %arg9[%c0_31, %c0_32, %c0_33] : memref<1x8x32xf32, #tpu.memory_space<vmem>>, vector<1x8x32xf32>
      %48 = vector.shape_cast %47 : vector<1x8x32xf32> to vector<8x32xf32>
      %49 = vector.shape_cast %46 : vector<8x32xf32> to vector<1x8x32xf32>
      tpu.vector_store %arg9[%c0_31, %c0_32, %c0_33], %49 {strides = array<i32>} : memref<1x8x32xf32, #tpu.memory_space<vmem>>, vector<1x8x32xf32>,
    } else {
    }
    return
  }
  func.func @transform_0(%arg0: i32, %arg1: i32, %arg2: i32) -> (i32, i32, i32) {
    %c0_i32 = arith.constant 0 : i32
    %c0_i32_0 = arith.constant 0 : i32
    %c0_i32_1 = arith.constant 0 : i32
    return %arg0, %c0_i32, %c0_i32_0 : i32, i32, i32
  }
  func.func @transform_1(%arg0: i32, %arg1: i32, %arg2: i32) -> (i32, i32, i32) {
    %c0_i32 = arith.constant 0 : i32
    %c0_i32_0 = arith.constant 0 : i32
    %c0_i32_1 = arith.constant 0 : i32
    return %arg2, %c0_i32, %c0_i32_0 : i32, i32, i32
  }
  func.func @transform_2(%arg0: i32, %arg1: i32, %arg2: i32) -> (i32, i32, i32) {
    %c0_i32 = arith.constant 0 : i32
    %c0_i32_0 = arith.constant 0 : i32
    %c0_i32_1 = arith.constant 0 : i32
    return %arg2, %c0_i32, %c0_i32_0 : i32, i32, i32
  }
  func.func @transform_3(%arg0: i32, %arg1: i32, %arg2: i32) -> (i32, i32, i32) {
    %c0_i32 = arith.constant 0 : i32
    %c0_i32_0 = arith.constant 0 : i32
    %c0_i32_1 = arith.constant 0 : i32
    return %arg2, %c0_i32, %c0_i32_0 : i32, i32, i32
  }
  func.func @transform_4(%arg0: i32, %arg1: i32, %arg2: i32) -> (i32, i32, i32) {
    %c0_i32 = arith.constant 0 : i32
    %c0_i32_0 = arith.constant 0 : i32
    %c0_i32_1 = arith.constant 0 : i32
    return %arg2, %c0_i32, %c0_i32_0 : i32, i32, i32
  }
  func.func @transform_5(%arg0: i32, %arg1: i32, %arg2: i32) -> (i32, i32) {
    %c0_i32 = arith.constant 0 : i32
    %c0_i32_0 = arith.constant 0 : i32
    %c0_i32_1 = arith.constant 0 : i32
    return %c0_i32, %c0_i32_0 : i32, i32
  }
  func.func @transform_6(%arg0: i32, %arg1: i32, %arg2: i32) -> (i32, i32, i32) {
    %c0_i32 = arith.constant 0 : i32
    %c0_i32_0 = arith.constant 0 : i32
    return %arg0, %arg1, %c0_i32 : i32, i32, i32
  }
}

</mosaic_0001>

<bundles_post_ra>
// kernel: tpu_custom_call.1
= control target key start
LH: loop header
LB: loop body
LE: loop exit
PB: predicated region body
PF: predicated region fallthrough
CT: control target
= control target key end

     0   :  { %11 = vsyncpa [#allocation5], 0  ;;  %s1336_s0 = inlined_call_operand.vmem [shape: f32[2,8,32], index: 0, kind: input, shape index: {}]   ;;  %s1337_s1 = inlined_call_operand.vmem [shape: bf16[4,32,8], index: 1, kind: input, shape index: {}]   ;;  %s1338_s2 = inlined_call_operand.vmem [shape: bf16[4,32,8], index: 2, kind: input, shape index: {}]   ;;  %s1339_s3 = inlined_call_operand.vmem [shape: bf16[4,32,8], index: 3, kind: input, shape index: {}]   ;;  %s1340_s4 = inlined_call_operand.vmem [shape: bf16[4,8,32], index: 4, kind: input, shape index: {}]   ;;  %s1341_s5 = inlined_call_operand.vmem [shape: f32[1,32], index: 5, kind: input, shape index: {}]   ;;  %s1342_s6 = inlined_call_operand.hbm [shape: f32[2,8,32], index: 6, kind: output, shape index: {}]  }
   0x1   :  { %13 = vsyncpa [#allocation5 + $0x1], 0  ;;  %s1161_s21 = smov 0   ;;  %s1163_s22 = smov 0  }
   0x2   :  { %s1165_s23 = smov 0   ;;  %s1167_s24 = smov 0  }
   0x3   :  { %s1169_s25 = smov 0   ;;  %s1171_s26 = smov 0  }
   0x4   :  { %s1173_s27 = smov 0   ;;  %s1175_s28 = smov 0  }
   0x5 LB: > { %1350 = sst [smem:[#allocation7_spill]] %s1092_s21  ;;  %s851_s29 = sadd.s32 4294967295, %s1120_s28   ;;  %s1120_s28 = sphi %s1175_s28, %s19_s28   ;;  %s1116_s27 = sphi %s1173_s27, %s1368_s27   ;;  %s1112_s26 = sphi %s1171_s26, %s1371_s26   ;;  %s1108_s25 = sphi %s1169_s25, %s1366_s25   ;;  %s1104_s24 = sphi %s1167_s24, %s1365_s24   ;;  %s1100_s23 = sphi %s1165_s23, %s1364_s23   ;;  %s1096_s22 = sphi %s1163_s22, %s1370_s22   ;;  %s1092_s21 = sphi %s1161_s21, %s1369_s21  }
   0x6   : > { %1351 = sst [smem:[#allocation8_spill]] %s1100_s23  ;;  %s852_s30 = sadd.s32 4294967294, %s1120_s28  }
   0x7   : > { %1352 = sst [smem:[#allocation9_spill]] %s1112_s26  ;;  %s31_s7 = sadd.s32 1, %s1112_s26 }
   0x8   : > { %1353 = sst [smem:[#allocation10_spill]] %s1116_s27  ;;  %p32_p0 = scmp.ge.s32.totalorder %s31_s7, 4 }
   0x9   : > { %s38_s8 = sadd.s32 1, %s1116_s27  ;;  %p208_p1 = scmp.ne.s32.totalorder %s1100_s23, %s1096_s22 }
   0xa   : > { %p209_p2 = scmp.eq.s32.totalorder %s851_s29, 7  ;;  %s1373_s7 = smov (%p32_p0, %s31_s7), 0 }
   0xb   : > { %1354 = sst [smem:[#allocation11_spill]] %s1373_s7  ;;  %s1375_s8 = smov (!%p32_p0, %s38_s8), %s1116_s27 }
   0xc   : > { %p1210_p3 = por %p209_p2, %p208_p1  ;;  %p214_p4 = scmp.ne.s32.totalorder %s1096_s22, %s1092_s21 }
   0xd   : > { %p40_p5 = scmp.ge.s32.totalorder %s1375_s8, 2  ;;  %p215_p6 = scmp.eq.s32.totalorder %s852_s30, 7 }
   0xe   : > { %p855_p7 = scmp.ge.s32.totalorder %s1120_s28, 1  ;;  %p274_p8 = scmp.lt.s32.totalorder %s1120_s28, 9 }
   0xf   : > { %s1377_s8 = smov (%p40_p5, %s1375_s8), 0  ;;  %p1220_p9 = por %p215_p6, %p214_p4 }
  0x10   : > { %1356 = sst [smem:[#allocation12_spill]] %s1377_s8  ;;  %p275_p10 = pnand %p855_p7, %p274_p8 }
  0x11   : > { %s1357_s10 = scalar_select %p1220_p9, 1, 0 }
  0x12   : > { %s193_s11 = ssub.s32 %s1116_s27, %s1377_s8  ;;  %s198_s12 = sadd.s32 1, %s1100_s23 }
  0x13   : > { %1358 = sst [smem:[#allocation13_spill]] %s1357_s10  ;;  %p196_p11 = scmp.eq.s32.totalorder %s193_s11, 0 }
  0x14   : > { %278 = sbr.rel (%p275_p10) target bundleno = 1027 (0x403), region = 44  ;;  %s1346_s14 = sand.u32 (!%p275_p10), 1, %s1096_s22  }
  0x15   : > { %s1228_s13 = scalar_select %p196_p11, %s1100_s23, %s198_s12  }
  0x16   : > { %p322_p12 = scmp.lt.s32.totalorder (!%p275_p10), %s1108_s25, 1  ;;  %s1234_s15 = sshll.u32 (!%p275_p10), %s1346_s14, 3 }
  0x17   : > { %1359 = sst [smem:[#allocation14_spill]] %s1228_s13  ;;  %p326_p13 = scmp.lt.s32.totalorder (!%p275_p10), %s1104_s24, 3 }
  0x18   : > { %p865_p0 = scmp.ne.s32.totalorder (!%p275_p10), %s1104_s24, 0 }
  0x19   : > { %s323_s16 = scalar_select %p322_p12, %s1108_s25, 1 }
  0x1a   : > { %s327_s17 = scalar_select %p326_p13, %s1104_s24, 3 }
  0x1b   : > { %s857_s18 = sshll.u32 %s323_s16, 3  ;;  %349 = sbr.rel (%p865_p0) target bundleno = 36 (0x24), region = 48 }
  0x1c   : > { %s325_s29 = scalar_lea.vmem %s1336_s0, %s857_s18  ;;  %s884_s30 = sshll.u32 %s327_s17, 4 }
  0x1d   : > { %s330_s8 = scalar_lea.vmem %s1337_s1, %s884_s30  ;;  %s335_s26 = scalar_lea.vmem %s1338_s2, %s884_s30 }
  0x1e   : > { %s1251_s23 = scalar_lea.vmem %s1339_s3, %s884_s30  ;;  %s864_s10 = sshll.u32 %s327_s17, 2 }
  0x1f   : > { %s1256_s19 = scalar_lea.vmem %s1340_s4, %s864_s10  ;;  %s321_s18 = scalar_lea.vmem [#allocation4], %s1234_s15 }
  0x20   : > { %vm350_vm0 = vcmask 261120   ;;  %v352_v0 = vld [vmem:[%s325_s29] sm:$0xff]  ;;  %vm354_vm1 = vcmask 257024   ;;  %v1122_v1 = vmov 0.0  }
  0x21   : > { %351 = vst.msk [vmem:[#allocation2] sm:$0xff] %vm350_vm0, %v1122_v1  ;;  %v353_v2 = vpack.c.bf16 %v352_v0, %v352_v0 }
  0x23   : > { %355 = vst.msk [vmem:[#allocation3] sm:$0xf] %vm354_vm1, %v353_v2 }
  0x24 PF: > { %v1018_v3 = vld [vmem:[%s335_s26 + $0x8] sm:$0xff]   ;;  %v1123_v4 = vmov 0.0   ;;  %v1020_v6 = vld [vmem:[%s335_s26] sm:$0xff]   ;;  %vm1124_vm2 = vmmov 0   ;;  %vm379_vm3 = vcmask 261120   ;;  %vm540_vm4 = vcmask 64512  }
  0x25   : > { %910 = vmatprep.subr.bf16.mxu1 %v1123_v4  ;;  %902 = vmatprep.subr.bf16.mxu0 %v1123_v4  ;;  %v1019_v5 = vld [vmem:[%s330_s8 + $0x8] sm:$0xff]   ;;  %v1021_v7 = vld [vmem:[%s330_s8] sm:$0xff]   ;;  %vm601_vm5 = vcmask 1043456   ;;  %p878_p1 = scmp.ne.s32.totalorder %s1104_s24, 3 }
  0x26   : > { %911 = vmatpush3.bf16.msra.mxu1 %v1018_v3  ;;  %914 = vmatprep.mubr.msk.bf16.mxu1 %vm1124_vm2, %v1123_v4  ;;  %v1022_v10 = vld [vmem:[%s1251_s23 + $0x8] sm:$0xff]   ;;  %v1023_v11 = vld [vmem:[%s1251_s23] sm:$0xff]  }
  0x27   : > { %903 = vmatpush3.bf16.msra.mxu0 %v1019_v5  ;;  %912 = vmatprep.subr.bf16.mxu1 %v1123_v4  ;;  %v649_v40 = vld [vmem:[%s1256_s19] sm:$0xf] }
  0x28   : > { %904 = vmatprep.subr.bf16.mxu0 %v1123_v4  ;;  %906 = vmatprep.mubr.msk.bf16.mxu0 %vm1124_vm2, %v1123_v4  ;;  %v654_v41 = vsel %vm601_vm5, %v649_v40, 0  ;;  %v647_v50 = vld [vmem:[#allocation2] sm:$0xff] }
  0x2a   : > { %913 = vmatpush3.bf16.msra.mxu1 %v1020_v6  ;;  %v362_v8 = vld [vmem:[#allocation3] sm:$0xf] }
  0x2b   : > { %905 = vmatpush3.bf16.msra.mxu0 %v1021_v7  ;;  %v361_v9 = vld [vmem:[#allocation3] sm:$0xf]  ;;  %926 = vmatprep.subr.bf16.mxu1 %v1123_v4 }
  0x2c   : > { %918 = vmatprep.subr.bf16.mxu0 %v1123_v4 }
  0x2d   : > { %915 = vmatmul.mubr.msk.bf16.vlgmr.msra.gmra.mxu1 %vm379_vm3, %v362_v8 }
  0x2e   : > { %907 = vmatmul.mubr.msk.bf16.vlgmr.msra.gmra.mxu0 %vm379_vm3, %v361_v9  ;;  %928 = vmatprep.mubr.msk.bf16.mxu1 %vm1124_vm2, %v1123_v4 }
  0x2f   : > { %922 = vmatprep.mubr.msk.bf16.mxu0 %vm1124_vm2, %v1123_v4  ;;  %919 = vmatpush3.bf16.msra.mxu0 %v1022_v10 }
  0x30   : > { %920 = vmatprep.subr.bf16.mxu0 %v1123_v4 }
  0x33   : > { %921 = vmatpush3.bf16.msra.mxu0 %v1023_v11 }
  0x34   : > { %932 = vmatprep.subr.bf16.mxu0 %v1123_v4 }
  0x36   : > { %923 = vmatmul.mubr.msk.bf16.vlgmr.msra.gmra.mxu0 %vm379_vm3, %v362_v8 }
  0x37   : > { %934 = vmatprep.mubr.msk.bf16.mxu0 %vm1124_vm2, %v1123_v4 }
  0xed   : > { %v476_v12 = vpop.f32.mrf.mxu1 }
  0xee   : > { %v539_v13 = vpack.c.bf16 %v476_v12, %v476_v12  ;;  %v417_v14 = vpop.f32.mrf.mxu0 }
  0xef   : > { %v916_v15 = vpop.f32.mrf.mxu1  ;;  %v538_v21 = vpack.c.bf16 %v417_v14, %v417_v14 }
  0xf0   : > { %v545_v16 = vsel %vm540_vm4, %v539_v13, 0  ;;  %v908_v17 = vpop.f32.mrf.mxu0 }
  0xf1   : > { %v479_v18 = vpop.f32.mrf.mxu1  ;;  %927 = vmatpush3.bf16.xpose.msra.mxu1 %v545_v16 }
  0xf2   : > { %v420_v19 = vpop.f32.mrf.mxu0  ;;  %938 = vmatprep.subr.bf16.mxu1 %v1123_v4 }
  0xf3   : > { %v917_v20 = vpop.f32.mrf.mxu1 }
  0xf4   : > { %v909_v22 = vpop.f32.mrf.mxu0 }
  0xf6   : > { %v532_v28 = vpop.f32.mrf.mxu0 }
  0xf7   : > { %v597_v29 = vpack.c.bf16 %v532_v28, %v532_v28 }
  0xf8   : > { %929 = vmatmul.mubr.msk.bf16.vlgmr.msra.gmra.mxu1 %vm540_vm4, %v538_v21  ;;  %v924_v30 = vpop.f32.mrf.mxu0 }
  0xf9   : > { %940 = vmatprep.mubr.msk.bf16.mxu1 %vm1124_vm2, %v1123_v4  ;;  %v603_v31 = vsel %vm601_vm5, %v597_v29, 0  ;;  %939 = vmatpush3.bf16.msra.mxu1 %v654_v41 }
  0xfa   : > { %v535_v32 = vpop.f32.mrf.mxu0  ;;  %933 = vmatpush3.bf16.msra.mxu0 %v603_v31 }
  0xfc   : > { %v925_v33 = vpop.f32.mrf.mxu0 }
 0x1b8   : > { %v581_v23 = vpop.f32.mrf.mxu1 }
 0x1b9   : > { %v587_v24 = vsel %vm540_vm4, %v581_v23, -inf }
 0x1ba   : > { %588 = vmax.xlane.f32.xlu0 %v587_v24  ;;  %v930_v25 = vpop.f32.mrf.mxu1 }
 0x1bc   : > { %v584_v26 = vpop.f32.mrf.mxu1 }
 0x1be   : > { %v931_v27 = vpop.f32.mrf.mxu1 }
 0x243   : > { %v589_v34 = vpop.xlane.xlu0 %588 }
 0x244   : > { %v590_v35 = vsub.f32 %v581_v23, %v589_v34 }
 0x246   : > { %v591_v36 = vmul.f32 1.442695, %v590_v35 }
 0x248   : > { %1024 = vpow2.f32 %v591_v36 }
 0x255   : > { %v1025_v37 = vpop.eup %1024 }
 0x256   : > { %v593_v38 = vsel %vm540_vm4, %v1025_v37, 0.0  ;;  %v596_v39 = vpack.c.bf16 %v1025_v37, %v1025_v37 }
 0x257   : > { %594 = vadd.xlane.f32.xlu0 %v593_v38 }
 0x258   : > { %935 = vmatmul.mubr.msk.bf16.vlgmr.msra.gmra.mxu0 %vm540_vm4, %v596_v39 }
 0x2e0   : > { %v595_v42 = vpop.xlane.xlu0 %594 }
 0x2e1   : > { %1026 = vrcp.f32 %v595_v42 }
 0x2ee   : > { %v1027_v43 = vpop.eup %1026 }
 0x318   : > { %v639_v44 = vpop.f32.mrf.mxu0 }
 0x319   : > { %v646_v45 = vmul.f32 %v1027_v43, %v639_v44 }
 0x31a   : > { %v936_v46 = vpop.f32.mrf.mxu0 }
 0x31b   : > { %v648_v47 = vpack.c.bf16 %v646_v45, %v646_v45 }
 0x31c   : > { %v642_v48 = vpop.f32.mrf.mxu0 }
 0x31d   : > { %941 = vmatmul.mubr.msk.bf16.vlgmr.msra.gmra.mxu1 %vm540_vm4, %v648_v47 }
 0x31e   : > { %v937_v49 = vpop.f32.mrf.mxu0 }
 0x3dd   : > { %v690_v51 = vpop.f32.mrf.mxu1 }
 0x3de   : > { %v696_v52 = vadd.f32 %v690_v51, %v647_v50 }
 0x3df   : > { %v942_v53 = vpop.f32.mrf.mxu1  ;;  %701 = sbr.rel (%p878_p1) target bundleno = 1003 (0x3eb), region = 52 }
 0x3e0   : > { %697 = vst.msk [vmem:[#allocation2] sm:$0xff] %vm379_vm3, %v696_v52 }
 0x3e1   : > { %v693_v54 = vpop.f32.mrf.mxu1 }
 0x3e3   : > { %v943_v55 = vpop.f32.mrf.mxu1 }
 0x3e4   : > { %v879_v57 = vld [vmem:[%s1341_s5] ss:$0 sm:$0xff] }
 0x3e7   : > { %v702_v56 = vld [vmem:[#allocation2] sm:$0xff] }
 0x3e8   : > { %v710_v58 = vadd.f32 %v879_v57, %v702_v56 }
 0x3ea   : > { %711 = vst.msk [vmem:[%s321_s18] sm:$0xff] %vm379_vm3, %v710_v58 }
 0x3eb PF: > { %s881_s26 = sshll.u32 %s1108_s25, 7  ;;  %s727_s8 = sshll.u32 %s321_s18, 4  ;;  %s728_s8 = int_to_ptr.vmem [resolvable:$true] %s727_s8 }
 0x3ec   : > { %s725_s24 = scalar_lea.hbm %s1342_s6, %s881_s26  ;;  %s1360_s10 = sand.u32 1, %s1096_s22  }
 0x3ed   : > { %s713_s13 = scalar_lea.sflag [#allocation5], %s1360_s10  ;;  %s1028_s14 = scalar_lea.vmem %s728_s8, 128 }
 0x3ee   : > { %p1029_p2 = scmp.ne.s32.totalorder %s728_s8, %s1028_s14  ;;  %s1125_s17 = smov [#allocation4]  }
 0x3ef   : > { %s1032_s20 = sshll.u32 %s1125_s17, 4  ;;  %s1033_s20 = int_to_ptr.vmem [resolvable:$false] %s1032_s20 }
 0x3f0   : > { %p1030_p4 = pnand %p1029_p2, %p1210_p3  ;;  %s1034_s29 = scalar_lea.vmem %s1033_s20, 256 }
 0x3f1   : > { %p1035_p6 = scmp.lt.s32.totalorder %s728_s8, %s1033_s20  ;;  %p1036_p7 = scmp.lt.s32.totalorder %s1034_s29, %s1028_s14 }
 0x3f2   : > { %p1031_p5 = pneg %p1030_p4 }
 0x3f3   : > { %p1037_p8 = por %p1036_p7, %p1035_p6 }
 0x3f5   : > { %p1038_p10 = pnand %p1037_p8, %p1031_p5 }
 0x3f7   : > { %1041 = shalt.err (!%p1038_p10)
}
 0x3f8   : > { %s1042_s25 = scalar_lea.hbm %s725_s24, 128  ;;  %s1046_s11 = scalar_lea.hbm %s1342_s6, 256 }
 0x3f9   : > { %p1043_p11 = scmp.ne.s32.totalorder %s725_s24, %s1042_s25  ;;  %p1047_p0 = scmp.lt.s32.totalorder %s725_s24, %s1342_s6 }
 0x3fa   : > { %p1048_p1 = scmp.lt.s32.totalorder %s1046_s11, %s1042_s25 }
 0x3fb   : > { %p1044_p12 = pnand %p1043_p11, %p1210_p3 }
 0x3fc   : > { %p1049_p2 = por %p1048_p1, %p1047_p0 }
 0x3fd   : > { %p1045_p13 = pneg %p1044_p12 }
 0x3ff   : > { %p1050_p4 = pnand %p1049_p2, %p1045_p13 }
 0x401   : > { %1053 = shalt.err (!%p1050_p4)
}
 0x402   : > { %944 = dma.vmem_to_hbm [thread:$0]  (%p1210_p3), %s728_s8, 128, %s725_s24, %s713_s13  }
 0x403 PF: > { %s1361_s19 = sld [smem:[#allocation7_spill]]  ;;  %p950_p5 = scmp.ge.s32.totalorder %s1120_s28, 2 }
 0x405   : > { %p947_p6 = pnand %p950_p5, %p1220_p9 }
 0x407   : > { %p948_p7 = pneg %p947_p6 }
 0x409   : > { %s739_s21 = sand.u32 1, %s1361_s19  }
 0x40a   : > { %s740_s23 = scalar_lea.sflag [#allocation5], %s739_s21 }
 0x40b   : > { %1087 = dma.done.wait (%p948_p7), %s740_s23, 128  }
 0x40c   : > { %1089 = vsyncadd (%p948_p7), %s740_s23, 4294967168  ;;  %s19_s28 = sadd.s32 1, %s1120_s28   ;;  %s1363_s26 = sld [smem:[#allocation8_spill]] }
 0x40d   : > { %p16_p8 = scmp.ge.s32.totalorder %s19_s28, 10   ;;  %s1364_s23 = sld [smem:[#allocation14_spill]] }
 0x40e   : > { %s1365_s24 = sld [smem:[#allocation9_spill]]  ;;  %s1369_s21 = smov %s1096_s22 }
 0x40f   : > { %s1366_s25 = sld [smem:[#allocation10_spill]] }
 0x410   : > { %s1367_s9 = sld [smem:[#allocation11_spill]] }
 0x411   : > { %s1368_s27 = sld [smem:[#allocation12_spill]] }
 0x412   : > { %s1370_s22 = smov %s1363_s26  ;;  %18 = sbr.rel (!%p16_p8) target bundleno = 5 (0x5), region = 100 }
 0x416   : > { %s1371_s26 = smov %s1367_s9 }
 0x417   :  { %745 = vsyncpa [#allocation5], 1 }
 0x418   :  { %747 = vsyncpa [#allocation5 + $0x1], 1 }

</bundles_post_ra>
